<compile_context>
chip_gen: v5e
topology: v5e:2x2
jax: 0.10.0
libtpu: 0.0.40
codegen_flags: <defaults>
</compile_context>

<pallas_src>
import numpy as np
import jax
import jax.numpy as jnp
from jax.experimental import pallas as pl
from jax.experimental.pallas import tpu as pltpu


# ----------------------------------------------------------------------------
# Deterministic parameter init (synthetic; mirrors the module's __init__ shapes)
# ----------------------------------------------------------------------------
def ortho_weights(shape, scale=1.0, rng=None):
    """NumPy port of baselines.a2c.utils ortho_init (2-D case only needed here)."""
    shape = tuple(shape)
    if len(shape) == 2:
        flat_shape = (shape[1], shape[0])
    else:
        raise NotImplementedError
    a = rng.normal(0.0, 1.0, flat_shape)
    u, _, v = np.linalg.svd(a, full_matrices=False)
    q = u if u.shape == flat_shape else v
    q = q.transpose().copy().reshape(shape)
    return (scale * q).astype(np.float32)


def linear_init(key, fan_in, fan_out):
    """PyTorch-style default Linear init: U(-1/sqrt(fan_in), 1/sqrt(fan_in))."""
    kw, kb = jax.random.split(key)
    bound = 1.0 / np.sqrt(fan_in)
    w = jax.random.uniform(kw, (fan_in, fan_out), jnp.float32, -bound, bound)
    b = jax.random.uniform(kb, (1, fan_out), jnp.float32, -bound, bound)
    return w, b


def _round_up(x, m):
    return ((x + m - 1) // m) * m


# ----------------------------------------------------------------------------
# Pallas kernel: 3-layer MLP + fused (pi | v) head, one batch tile per grid step
# ----------------------------------------------------------------------------
def policy_net_kernel(x_ref, w1_ref, b1_ref, w2_ref, b2_ref, w3_ref, b3_ref,
                      wh_ref, bh_ref, out_ref):
    # Activations arrive as f32 straight from HBM; cast to bf16 in-kernel (cheap VPU
    # pack, hidden under the MXU) instead of paying an extra wrapper-side HBM pass.
    x = x_ref[...].astype(jnp.bfloat16)
    h = jnp.dot(x, w1_ref[...], preferred_element_type=jnp.float32) + b1_ref[...]
    h = jnp.maximum(h, 0.0).astype(jnp.bfloat16)
    h = jnp.dot(h, w2_ref[...], preferred_element_type=jnp.float32) + b2_ref[...]
    h = jnp.maximum(h, 0.0).astype(jnp.bfloat16)
    h = jnp.dot(h, w3_ref[...], preferred_element_type=jnp.float32) + b3_ref[...]
    h = jnp.maximum(h, 0.0).astype(jnp.bfloat16)
    # Fused pi/v head: lane-dense 128-wide output, f32 accumulate, bf16 store.
    y = jnp.dot(h, wh_ref[...], preferred_element_type=jnp.float32) + bh_ref[...]
    out_ref[...] = y.astype(out_ref.dtype)


def _choose_batch_tile(N, tb):
    """Batch tile selection.
    Small N: a single 16-row-aligned tile (bf16 sublane packing).
    Larger N: a multiple of 256 (feeds the 256x256 MXU, amortizes ~0.35us/step and
    per-step MXU weight pushes) capped so the grid has >=2 steps, keeping both v7x
    TensorCores busy under dimension_semantics=("parallel",)."""
    if N <= 256:
        return _round_up(max(N, 16), 16)
    half = _round_up((N + 1) // 2, 256)
    return max(256, min(_round_up(tb, 256), half))


def policy_net_forward(states, params, in_size, out_size, tb=512):
    """states: (N, ...) with prod(trailing dims) == in_size. Returns (pi, v) in f32."""
    N = states.shape[0]
    x = states.reshape(N, in_size)            # no pad, no cast: kernel reads f32 directly

    (w1, b1, w2, b2, w3, b3, wpi, bpi, wv, bv) = params

    H1, H2, H3 = 512, 256, 128
    HPAD = max(128, _round_up(out_size + 1, 128))   # lane-dense fused (pi|v) head width
    TB = _choose_batch_tile(N, tb)
    grid = (pl.cdiv(N, TB),)                        # ragged last tile handled by Pallas

    # Weights cast to bf16 once per call (tiny arrays); biases stay f32.
    w1b = w1.astype(jnp.bfloat16)
    w2b = w2.astype(jnp.bfloat16)
    w3b = w3.astype(jnp.bfloat16)
    # fused head: columns [0:out_size] = pi, column [out_size] = v, rest zero
    wh = jnp.zeros((H3, HPAD), jnp.bfloat16)
    wh = wh.at[:, :out_size].set(wpi.astype(jnp.bfloat16))
    wh = wh.at[:, out_size:out_size + 1].set(wv.astype(jnp.bfloat16))
    bh = jnp.zeros((1, HPAD), jnp.float32)
    bh = bh.at[:, :out_size].set(bpi)
    bh = bh.at[:, out_size:out_size + 1].set(bv)

    def full_spec(shape):
        # weights / biases: single full-resident VMEM block, constant across the grid.
        # (Could add pipeline_mode=pl.Buffered(1) to drop the useless second buffer;
        #  footprint is ~1 MiB total so left at the default for robustness.)
        return pl.BlockSpec(shape, lambda i: (0, 0))

    in_specs = [
        pl.BlockSpec((TB, in_size), lambda i: (i, 0)),   # activations: tiled over batch,
                                                          # last dim == full array dim
        full_spec((in_size, H1)), full_spec((1, H1)),
        full_spec((H1, H2)), full_spec((1, H2)),
        full_spec((H2, H3)), full_spec((1, H3)),
        full_spec((H3, HPAD)), full_spec((1, HPAD)),
    ]
    out_specs = pl.BlockSpec((TB, HPAD), lambda i: (i, 0))

    flops = 2 * N * (in_size * H1 + H1 * H2 + H2 * H3 + H3 * HPAD)
    bytes_accessed = (
        4 * N * in_size                                              # f32 activations in
        + 2 * (w1b.size + w2b.size + w3b.size + wh.size)             # bf16 weights
        + 4 * (b1.size + b2.size + b3.size + bh.size)                # f32 biases
        + 2 * N * HPAD                                               # bf16 fused output
    )
    cost = pl.CostEstimate(flops=flops, transcendentals=0, bytes_accessed=bytes_accessed)

    out = pl.pallas_call(
        policy_net_kernel,
        out_shape=jax.ShapeDtypeStruct((N, HPAD), jnp.bfloat16),
        grid=grid,
        in_specs=in_specs,
        out_specs=out_specs,
        compiler_params=pltpu.CompilerParams(dimension_semantics=("parallel",)),
        cost_estimate=cost,
    )(x, w1b, b1, w2b, b2, w3b, b3, wh, bh)

    # Slice + upcast the (N, 128) bf16 fused output into the module's (pi, v) outputs.
    pi_out = out[:, :out_size].astype(jnp.float32)
    v_out = out[:, out_size:out_size + 1].astype(jnp.float32)
    return pi_out, v_out


# ----------------------------------------------------------------------------
# Pure-JAX reference (same bf16 operand rounding, f32 accumulation) for checking
# ----------------------------------------------------------------------------
def policy_net_ref(states, params, in_size):
    (w1, b1, w2, b2, w3, b3, wpi, bpi, wv, bv) = params
    N = states.shape[0]
    h = states.reshape(N, in_size).astype(jnp.bfloat16)

    def lin_relu(h, w, b):
        y = jnp.dot(h, w.astype(jnp.bfloat16), preferred_element_type=jnp.float32) + b
        return jnp.maximum(y, 0.0).astype(jnp.bfloat16)

    h = lin_relu(h, w1, b1)
    h = lin_relu(h, w2, b2)
    h = lin_relu(h, w3, b3)
    pi = jnp.dot(h, wpi.astype(jnp.bfloat16), preferred_element_type=jnp.float32) + bpi
    v = jnp.dot(h, wv.astype(jnp.bfloat16), preferred_element_type=jnp.float32) + bv
    return pi, v


if __name__ == "__main__":
    # Small synthetic configuration consistent with the module.
    N = 8
    C, H, W = 4, 4, 4
    in_size = C * H * W          # 64
    out_size = 8

    key = jax.random.PRNGKey(0)
    k_x, k1, k2, k3, k_bpi, k_bv = jax.random.split(key, 6)

    # fc stack (PyTorch default Linear init, deterministic)
    w1, b1 = linear_init(k1, in_size, 512)
    w2, b2 = linear_init(k2, 512, 256)
    w3, b3 = linear_init(k3, 256, 128)

    # pi / v heads: orthogonal weight init as in the module (PyTorch stores (out, in)
    # -> transpose to (in, out) for the kernel's y = x @ W layout).
    np_rng = np.random.RandomState(0)
    wpi = jnp.asarray(ortho_weights((out_size, 128), scale=0.01, rng=np_rng).T)
    wv = jnp.asarray(ortho_weights((1, 128), scale=1.0, rng=np_rng).T)
    bound_pi = 1.0 / np.sqrt(128)
    bpi = jax.random.uniform(k_bpi, (1, out_size), jnp.float32, -bound_pi, bound_pi)
    bv = jax.random.uniform(k_bv, (1, 1), jnp.float32, -bound_pi, bound_pi)

    params = (w1, b1, w2, b2, w3, b3, wpi, bpi, wv, bv)

    # NCHW-shaped synthetic "states"; forward flattens to (N, in_size).
    states = jax.random.normal(k_x, (N, C, H, W), jnp.float32)

    pi_out, v_out = policy_net_forward(states, params, in_size, out_size)
    jax.block_until_ready((pi_out, v_out))

    pi_ref, v_ref = policy_net_ref(states, params, in_size)
    assert pi_out.shape == (N, out_size) and v_out.shape == (N, 1)
    np.testing.assert_allclose(np.asarray(pi_out), np.asarray(pi_ref), rtol=1e-2, atol=1e-2)
    np.testing.assert_allclose(np.asarray(v_out), np.asarray(v_ref), rtol=1e-2, atol=1e-2)

    print("KERNEL_OK")
</pallas_src>

<mosaic_0001>
module attributes {stable_mosaic.version = 11 : i64} {
  func.func @policy_net_kernel(%arg0: i32, %arg1: memref<16x64xf32, #tpu.memory_space<vmem>>, %arg2: memref<64x512xbf16, #tpu.memory_space<vmem>>, %arg3: memref<1x512xf32, #tpu.memory_space<vmem>>, %arg4: memref<512x256xbf16, #tpu.memory_space<vmem>>, %arg5: memref<1x256xf32, #tpu.memory_space<vmem>>, %arg6: memref<256x128xbf16, #tpu.memory_space<vmem>>, %arg7: memref<1x128xf32, #tpu.memory_space<vmem>>, %arg8: memref<128x128xbf16, #tpu.memory_space<vmem>>, %arg9: memref<1x128xf32, #tpu.memory_space<vmem>>, %arg10: memref<16x128xbf16, #tpu.memory_space<vmem>>) attributes {dimension_semantics = [#tpu.dimension_semantics<parallel>], iteration_bounds = array<i64: 1>, scalar_prefetch = 0 : i64, scratch_operands = 0 : i64, tpu.core_type = #tpu.core_type<tc>, window_params = [{transform_indices = @transform_0, window_bounds = array<i64: 16, 64>}, {pipeline_mode = #tpu.pipeline_mode<synchronous>, transform_indices = @transform_1, window_bounds = array<i64: 64, 512>}, {pipeline_mode = #tpu.pipeline_mode<synchronous>, transform_indices = @transform_2, window_bounds = array<i64: 1, 512>}, {pipeline_mode = #tpu.pipeline_mode<synchronous>, transform_indices = @transform_3, window_bounds = array<i64: 512, 256>}, {pipeline_mode = #tpu.pipeline_mode<synchronous>, transform_indices = @transform_4, window_bounds = array<i64: 1, 256>}, {pipeline_mode = #tpu.pipeline_mode<synchronous>, transform_indices = @transform_5, window_bounds = array<i64: 256, 128>}, {pipeline_mode = #tpu.pipeline_mode<synchronous>, transform_indices = @transform_6, window_bounds = array<i64: 1, 128>}, {pipeline_mode = #tpu.pipeline_mode<synchronous>, transform_indices = @transform_7, window_bounds = array<i64: 128, 128>}, {pipeline_mode = #tpu.pipeline_mode<synchronous>, transform_indices = @transform_8, window_bounds = array<i64: 1, 128>}, {transform_indices = @transform_9, window_bounds = array<i64: 16, 128>}]} {
    %c0 = arith.constant 0 : index
    %c0_0 = arith.constant 0 : index
    %0 = vector.load %arg1[%c0, %c0_0] : memref<16x64xf32, #tpu.memory_space<vmem>>, vector<16x64xf32>
    %1 = arith.truncf %0 : vector<16x64xf32> to vector<16x64xbf16>
    %c0_1 = arith.constant 0 : index
    %c0_2 = arith.constant 0 : index
    %2 = vector.load %arg2[%c0_1, %c0_2] : memref<64x512xbf16, #tpu.memory_space<vmem>>, vector<64x512xbf16>
    %cst = arith.constant dense<0.000000e+00> : vector<16x512xf32>
    %3 = tpu.matmul %1, %2, %cst {dimension_numbers = #tpu.dot_dimension_numbers<[1], [0], [0], [1], [0, 0, 1, 1], [], []>} : vector<16x64xbf16>, vector<64x512xbf16>, vector<16x512xf32> -> vector<16x512xf32>
    %c0_3 = arith.constant 0 : index
    %c0_4 = arith.constant 0 : index
    %4 = vector.load %arg3[%c0_3, %c0_4] : memref<1x512xf32, #tpu.memory_space<vmem>>, vector<1x512xf32>
    %5 = vector.broadcast %4 : vector<1x512xf32> to vector<16x512xf32>
    %6 = arith.addf %3, %5 : vector<16x512xf32>
    %cst_5 = arith.constant 0.000000e+00 : f32
    %7 = vector.broadcast %cst_5 : f32 to vector<16x512xf32>
    %8 = arith.maximumf %6, %7 : vector<16x512xf32>
    %9 = arith.truncf %8 : vector<16x512xf32> to vector<16x512xbf16>
    %c0_6 = arith.constant 0 : index
    %c0_7 = arith.constant 0 : index
    %10 = vector.load %arg4[%c0_6, %c0_7] : memref<512x256xbf16, #tpu.memory_space<vmem>>, vector<512x256xbf16>
    %cst_8 = arith.constant dense<0.000000e+00> : vector<16x256xf32>
    %11 = tpu.matmul %9, %10, %cst_8 {dimension_numbers = #tpu.dot_dimension_numbers<[1], [0], [0], [1], [0, 0, 1, 1], [], []>} : vector<16x512xbf16>, vector<512x256xbf16>, vector<16x256xf32> -> vector<16x256xf32>
    %c0_9 = arith.constant 0 : index
    %c0_10 = arith.constant 0 : index
    %12 = vector.load %arg5[%c0_9, %c0_10] : memref<1x256xf32, #tpu.memory_space<vmem>>, vector<1x256xf32>
    %13 = vector.broadcast %12 : vector<1x256xf32> to vector<16x256xf32>
    %14 = arith.addf %11, %13 : vector<16x256xf32>
    %cst_11 = arith.constant 0.000000e+00 : f32
    %15 = vector.broadcast %cst_11 : f32 to vector<16x256xf32>
    %16 = arith.maximumf %14, %15 : vector<16x256xf32>
    %17 = arith.truncf %16 : vector<16x256xf32> to vector<16x256xbf16>
    %c0_12 = arith.constant 0 : index
    %c0_13 = arith.constant 0 : index
    %18 = vector.load %arg6[%c0_12, %c0_13] : memref<256x128xbf16, #tpu.memory_space<vmem>>, vector<256x128xbf16>
    %cst_14 = arith.constant dense<0.000000e+00> : vector<16x128xf32>
    %19 = tpu.matmul %17, %18, %cst_14 {dimension_numbers = #tpu.dot_dimension_numbers<[1], [0], [0], [1], [0, 0, 1, 1], [], []>} : vector<16x256xbf16>, vector<256x128xbf16>, vector<16x128xf32> -> vector<16x128xf32>
    %c0_15 = arith.constant 0 : index
    %c0_16 = arith.constant 0 : index
    %20 = vector.load %arg7[%c0_15, %c0_16] : memref<1x128xf32, #tpu.memory_space<vmem>>, vector<1x128xf32>
    %21 = vector.broadcast %20 : vector<1x128xf32> to vector<16x128xf32>
    %22 = arith.addf %19, %21 : vector<16x128xf32>
    %cst_17 = arith.constant 0.000000e+00 : f32
    %23 = vector.broadcast %cst_17 : f32 to vector<16x128xf32>
    %24 = arith.maximumf %22, %23 : vector<16x128xf32>
    %25 = arith.truncf %24 : vector<16x128xf32> to vector<16x128xbf16>
    %c0_18 = arith.constant 0 : index
    %c0_19 = arith.constant 0 : index
    %26 = vector.load %arg8[%c0_18, %c0_19] : memref<128x128xbf16, #tpu.memory_space<vmem>>, vector<128x128xbf16>
    %cst_20 = arith.constant dense<0.000000e+00> : vector<16x128xf32>
    %27 = tpu.matmul %25, %26, %cst_20 {dimension_numbers = #tpu.dot_dimension_numbers<[1], [0], [0], [1], [0, 0, 1, 1], [], []>} : vector<16x128xbf16>, vector<128x128xbf16>, vector<16x128xf32> -> vector<16x128xf32>
    %c0_21 = arith.constant 0 : index
    %c0_22 = arith.constant 0 : index
    %28 = vector.load %arg9[%c0_21, %c0_22] : memref<1x128xf32, #tpu.memory_space<vmem>>, vector<1x128xf32>
    %29 = vector.broadcast %28 : vector<1x128xf32> to vector<16x128xf32>
    %30 = arith.addf %27, %29 : vector<16x128xf32>
    %31 = arith.truncf %30 : vector<16x128xf32> to vector<16x128xbf16>
    %c0_23 = arith.constant 0 : index
    %c0_24 = arith.constant 0 : index
    %32 = vector.load %arg10[%c0_23, %c0_24] : memref<16x128xbf16, #tpu.memory_space<vmem>>, vector<16x128xbf16>
    tpu.vector_store %arg10[%c0_23, %c0_24], %31 {strides = array<i32>} : memref<16x128xbf16, #tpu.memory_space<vmem>>, vector<16x128xbf16>,
    return
  }
  func.func @transform_0(%arg0: i32) -> (i32, i32) {
    %c0_i32 = arith.constant 0 : i32
    %c0_i32_0 = arith.constant 0 : i32
    return %arg0, %c0_i32 : i32, i32
  }
  func.func @transform_1(%arg0: i32) -> (i32, i32) {
    %c0_i32 = arith.constant 0 : i32
    %c0_i32_0 = arith.constant 0 : i32
    %c0_i32_1 = arith.constant 0 : i32
    return %c0_i32, %c0_i32_0 : i32, i32
  }
  func.func @transform_2(%arg0: i32) -> (i32, i32) {
    %c0_i32 = arith.constant 0 : i32
    %c0_i32_0 = arith.constant 0 : i32
    %c0_i32_1 = arith.constant 0 : i32
    return %c0_i32, %c0_i32_0 : i32, i32
  }
  func.func @transform_3(%arg0: i32) -> (i32, i32) {
    %c0_i32 = arith.constant 0 : i32
    %c0_i32_0 = arith.constant 0 : i32
    %c0_i32_1 = arith.constant 0 : i32
    return %c0_i32, %c0_i32_0 : i32, i32
  }
  func.func @transform_4(%arg0: i32) -> (i32, i32) {
    %c0_i32 = arith.constant 0 : i32
    %c0_i32_0 = arith.constant 0 : i32
    %c0_i32_1 = arith.constant 0 : i32
    return %c0_i32, %c0_i32_0 : i32, i32
  }
  func.func @transform_5(%arg0: i32) -> (i32, i32) {
    %c0_i32 = arith.constant 0 : i32
    %c0_i32_0 = arith.constant 0 : i32
    %c0_i32_1 = arith.constant 0 : i32
    return %c0_i32, %c0_i32_0 : i32, i32
  }
  func.func @transform_6(%arg0: i32) -> (i32, i32) {
    %c0_i32 = arith.constant 0 : i32
    %c0_i32_0 = arith.constant 0 : i32
    %c0_i32_1 = arith.constant 0 : i32
    return %c0_i32, %c0_i32_0 : i32, i32
  }
  func.func @transform_7(%arg0: i32) -> (i32, i32) {
    %c0_i32 = arith.constant 0 : i32
    %c0_i32_0 = arith.constant 0 : i32
    %c0_i32_1 = arith.constant 0 : i32
    return %c0_i32, %c0_i32_0 : i32, i32
  }
  func.func @transform_8(%arg0: i32) -> (i32, i32) {
    %c0_i32 = arith.constant 0 : i32
    %c0_i32_0 = arith.constant 0 : i32
    %c0_i32_1 = arith.constant 0 : i32
    return %c0_i32, %c0_i32_0 : i32, i32
  }
  func.func @transform_9(%arg0: i32) -> (i32, i32) {
    %c0_i32 = arith.constant 0 : i32
    %c0_i32_0 = arith.constant 0 : i32
    return %arg0, %c0_i32 : i32, i32
  }
}

</mosaic_0001>

<bundles_post_ra>
// kernel: tpu_custom_call.1
= control target key start
LH: loop header
LB: loop body
LE: loop exit
PB: predicated region body
PF: predicated region fallthrough
CT: control target
= control target key end

     0   :  { %14 = vsyncpa [#allocation3], 0  ;;  %s1926_s0 = inlined_call_operand.hbm [shape: f32[8,64], index: 0, kind: input, shape index: {}]   ;;  %s1927_s1 = inlined_call_operand.hbm [shape: bf16[64,512], index: 1, kind: input, shape index: {}]   ;;  %s1928_s2 = inlined_call_operand.hbm [shape: f32[1,512], index: 2, kind: input, shape index: {}]   ;;  %s1929_s3 = inlined_call_operand.hbm [shape: bf16[512,256], index: 3, kind: input, shape index: {}]   ;;  %s1930_s4 = inlined_call_operand.vmem [shape: f32[1,256], index: 4, kind: input, shape index: {}]   ;;  %s1931_s5 = inlined_call_operand.hbm [shape: bf16[256,128], index: 5, kind: input, shape index: {}]   ;;  %s1932_s6 = inlined_call_operand.vmem [shape: f32[1,128], index: 6, kind: input, shape index: {}]   ;;  %s1933_s7 = inlined_call_operand.hbm [shape: bf16[128,128], index: 7, kind: input, shape index: {}]   ;;  %s1934_s8 = inlined_call_operand.vmem [shape: f32[1,128], index: 8, kind: input, shape index: {}]   ;;  %s1935_s9 = inlined_call_operand.hbm [shape: bf16[8,128], index: 9, kind: output, shape index: {}]  }
   0x1   :  { %15 = vsyncpa [#allocation6], 0 }
   0x2   :  { %16 = vsyncpa [#allocation9], 0 }
   0x3   :  { %17 = vsyncpa [#allocation12], 0 }
   0x4   :  { %18 = vsyncpa [#allocation4], 0  ;;  %s36_s11 = sshll.u32 %s1927_s1, 4  ;;  %s37_s11 = int_to_ptr.hbm [resolvable:$true] %s36_s11 }
   0x5   :  { %22 = vsyncadd [#allocation3], 128  ;;  %s1808_s12 = smov [#allocation5]   ;;  %s1809_s14 = smov 256  }
   0x6   :  { %s38_s13 = sshll.u32 %s1808_s12, 4  ;;  %s1810_s15 = smov 16   ;;  %s39_s13 = int_to_ptr.vmem [resolvable:$true] %s38_s13 }
   0x7   :  { %44 = dma.hbm_to_vmem [thread:$0]  %s37_s11, 2048, %s39_s13, [#allocation6], %s1809_s14, %s1809_s14, %s1810_s15  }
   0x8   :  { %s60_s18 = sshll.u32 %s1929_s3, 4  ;;  %s1811_s19 = smov [#allocation8]   ;;  %s61_s18 = int_to_ptr.hbm [resolvable:$true] %s60_s18 }
   0x9   :  { %s62_s20 = sshll.u32 %s1811_s19, 4  ;;  %s23_s23 = sshll.u32 %s1926_s0, 4  ;;  %s63_s20 = int_to_ptr.vmem [resolvable:$true] %s62_s20  ;;  %s24_s23 = int_to_ptr.hbm [resolvable:$true] %s23_s23 }
   0xa   :  { %s1812_s1 = smov 128   ;;  %s1813_s24 = smov 8  }
   0xb   :  { %68 = dma.hbm_to_vmem [thread:$0]  %s61_s18, 8192, %s63_s20, [#allocation9], %s1812_s1, %s1812_s1, %s1813_s24  }
   0xc   :  { %s50_s27 = sshll.u32 %s1928_s2, 4  ;;  %s1814_s28 = smov [#allocation2]   ;;  %s51_s27 = int_to_ptr.hbm [resolvable:$true] %s50_s27 }
   0xd   :  { %s25_s29 = sshll.u32 %s1814_s28, 4  ;;  %s1815_s3 = smov [#allocation7]   ;;  %s26_s29 = int_to_ptr.vmem [resolvable:$true] %s25_s29 }
   0xe   :  { %31 = dma.hbm_to_vmem [thread:$0]  %s24_s23, 128, %s26_s29, [#allocation3], %s1812_s1, %s1812_s1, %s1813_s24  }
   0xf   :  { %s52_s30 = sshll.u32 %s1815_s3, 4  ;;  %s75_s0 = sshll.u32 %s1931_s5, 4  ;;  %s53_s30 = int_to_ptr.vmem [resolvable:$true] %s52_s30  ;;  %s76_s0 = int_to_ptr.hbm [resolvable:$true] %s75_s0 }
  0x10   :  { %55 = dma.hbm_to_vmem [thread:$0]  %s51_s27, 64, %s53_s30, [#allocation6]  }
  0x11   :  { %s1816_s12 = smov [#allocation10]   ;;  %s90_s2 = sshll.u32 %s1933_s7, 4  ;;  %s91_s2 = int_to_ptr.hbm [resolvable:$true] %s90_s2 }
  0x12   :  { %s77_s13 = sshll.u32 %s1816_s12, 4  ;;  %s1817_s16 = smov 64   ;;  %s78_s13 = int_to_ptr.vmem [resolvable:$true] %s77_s13 }
  0x13   :  { %s1818_s17 = smov 4   ;;  %s1819_s18 = smov [#allocation11]  }
  0x14   :  { %83 = dma.hbm_to_vmem [thread:$0]  %s76_s0, 2048, %s78_s13, [#allocation9], %s1817_s16, %s1817_s16, %s1818_s17  }
  0x15   :  { %s92_s19 = sshll.u32 %s1819_s18, 4  ;;  %s93_s19 = int_to_ptr.vmem [resolvable:$true] %s92_s19 }
  0x16   :  { %98 = dma.hbm_to_vmem [thread:$0]  %s91_s2, 1024, %s93_s19, [#allocation12], %s1817_s16, %s1817_s16, %s1818_s17  }
  0x17   :  { %1798 = dma.done.wait [#allocation3], 256  }
  0x18   :  { %1799 = vsyncadd [#allocation3], 4294967040 }
  0x19   :  { %1800 = dma.done.wait [#allocation6], 2112  }
  0x1a   :  { %1801 = vsyncadd [#allocation6], 4294965184 }
  0x1b   :  { %1802 = dma.done.wait [#allocation9], 10240  }
  0x1c   :  { %1803 = vsyncadd [#allocation9], 4294957056 }
  0x1d   :  { %1804 = dma.done.wait [#allocation12], 1024  }
  0x1e   :  { %1805 = vsyncadd [#allocation12], 4294966272  ;;  %v1136_v0 = vld [vmem:[#allocation5 + $0x60] sm:$0xf]  ;;  %v1520_v1 = vld [vmem:[#allocation5 + $0x6c] sm:$0xf0] }
  0x1f   :  { %v1518_v2 = vld [vmem:[#allocation5 + $0x64] sm:$0xf]  ;;  %v1137_v3 = vor.u32 %v1520_v1, %v1136_v0  ;;  %v1138_v4 = vld [vmem:[#allocation5 + $0x70] sm:$0xf0]  ;;  %v1144_v5 = vld [vmem:[#allocation5 + $0x68] sm:$0xf] }
  0x20   :  { %v1521_v6 = vld [vmem:[#allocation5 + $0x74] sm:$0xf0]  ;;  %v1141_v7 = vor.u32 %v1518_v2, %v1138_v4  ;;  %v1120_v9 = vld [vmem:[#allocation5 + $0x40] sm:$0xf]  ;;  %v1516_v10 = vld [vmem:[#allocation5 + $0x4c] sm:$0xf0] }
  0x21   :  { %v1145_v8 = vor.u32 %v1521_v6, %v1144_v5  ;;  %v1514_v11 = vld [vmem:[#allocation5 + $0x44] sm:$0xf]  ;;  %243 = vmatpush.bf16.msra.mxu3 %v1137_v3  ;;  %v1121_v12 = vor.u32 %v1516_v10, %v1120_v9  ;;  %v1122_v13 = vld [vmem:[#allocation5 + $0x50] sm:$0xf0]  ;;  %v1128_v14 = vld [vmem:[#allocation5 + $0x48] sm:$0xf] }
  0x22   :  { %v1517_v15 = vld [vmem:[#allocation5 + $0x54] sm:$0xf0]  ;;  %257 = vmatpush.bf16.msra.mxu1 %v1141_v7  ;;  %v1125_v16 = vor.u32 %v1514_v11, %v1122_v13  ;;  %v1104_v18 = vld [vmem:[#allocation5 + $0x20] sm:$0xf]  ;;  %v1512_v19 = vld [vmem:[#allocation5 + $0x2c] sm:$0xf0] }
  0x23   :  { %271 = vmatpush.bf16.msra.mxu2 %v1145_v8  ;;  %v1129_v17 = vor.u32 %v1517_v15, %v1128_v14  ;;  %v1510_v20 = vld [vmem:[#allocation5 + $0x24] sm:$0xf]  ;;  %v1106_v21 = vld [vmem:[#allocation5 + $0x30] sm:$0xf0]  ;;  %v1112_v22 = vld [vmem:[#allocation5 + $0x28] sm:$0xf]  ;;  %v1105_v24 = vor.u32 %v1512_v19, %v1104_v18 }
  0x24   :  { %v1513_v23 = vld [vmem:[#allocation5 + $0x34] sm:$0xf0]  ;;  %v1109_v25 = vor.u32 %v1510_v20, %v1106_v21  ;;  %v1088_v27 = vld [vmem:[#allocation5] sm:$0xf]  ;;  %v1508_v28 = vld [vmem:[#allocation5 + $0xc] sm:$0xf0] }
  0x25   :  { %244 = vmatpush.bf16.msra.mxu3 %v1121_v12  ;;  %v1113_v26 = vor.u32 %v1513_v23, %v1112_v22  ;;  %v1506_v29 = vld [vmem:[#allocation5 + $0x4] sm:$0xf]  ;;  %v1090_v30 = vld [vmem:[#allocation5 + $0x10] sm:$0xf0]  ;;  %v1096_v31 = vld [vmem:[#allocation5 + $0x8] sm:$0xf]  ;;  %v1089_v36 = vor.u32 %v1508_v28, %v1088_v27 }
  0x26   :  { %258 = vmatpush.bf16.msra.mxu1 %v1125_v16  ;;  %v1509_v32 = vld [vmem:[#allocation5 + $0x14] sm:$0xf0]  ;;  %v126_v33 = vld [vmem:[#allocation2] sm:$0xff]  ;;  %v1519_v34 = vld [vmem:[#allocation5 + $0x6c] sm:$0xf]  ;;  %v1093_v40 = vor.u32 %v1506_v29, %v1090_v30  ;;  %vm235_vm0 = vcmask 523264  }
  0x27   :  { %272 = vmatpush.bf16.msra.mxu2 %v1129_v17  ;;  %v1146_v35 = vld [vmem:[#allocation5 + $0x78] sm:$0xf0]  ;;  %v1276_v38 = vld [vmem:[#allocation8 + $0xf0] sm:$0xf]  ;;  %v1097_v41 = vor.u32 %v1509_v32, %v1096_v31  ;;  %v1515_v42 = vld [vmem:[#allocation5 + $0x4c] sm:$0xf] }
  0x28   :  { %v127_v37 = vld [vmem:[#allocation2 + $0x8] sm:$0xff]  ;;  %v1212_v43 = vld [vmem:[#allocation8 + $0x70] sm:$0xf]  ;;  %v1149_v44 = vor.u32 %v1519_v34, %v1146_v35  ;;  %v1268_v51 = vld [vmem:[#allocation8 + $0xe0] sm:$0xf] }
  0x29   :  { %245 = vmatpush.bf16.msra.mxu3 %v1105_v24  ;;  %v1553_v39 = vld [vmem:[#allocation8 + $0xf4] sm:$0xf0]  ;;  %v1340_v47 = vld [vmem:[#allocation8 + $0x170] sm:$0xf]  ;;  %v1895_v49 = vpack.c.bf16 %v127_v37, %v126_v33  ;;  %v1551_v52 = vld [vmem:[#allocation8 + $0xe4] sm:$0xf0] }
  0x2a   :  { %259 = vmatpush.bf16.msra.mxu1 %v1109_v25  ;;  %v1277_v45 = vor.u32 %v1553_v39, %v1276_v38  ;;  %v1537_v46 = vld [vmem:[#allocation8 + $0x74] sm:$0xf0]  ;;  %v1204_v54 = vld [vmem:[#allocation8 + $0x60] sm:$0xf]  ;;  %v1535_v55 = vld [vmem:[#allocation8 + $0x64] sm:$0xf0]  ;;  %v1269_v59 = vor.u32 %v1551_v52, %v1268_v51 }
  0x2b   :  { %273 = vmatpush.bf16.msra.mxu2 %v1113_v26  ;;  %v1569_v48 = vld [vmem:[#allocation8 + $0x174] sm:$0xf0]  ;;  %v1213_v53 = vor.u32 %v1537_v46, %v1212_v43  ;;  %v1511_v58 = vld [vmem:[#allocation5 + $0x2c] sm:$0xf]  ;;  %v1332_v60 = vld [vmem:[#allocation8 + $0x160] sm:$0xf]  ;;  %v1205_v1 = vor.u32 %v1535_v55, %v1204_v54 }
  0x2c   :  { %v1130_v50 = vld [vmem:[#allocation5 + $0x58] sm:$0xf0]  ;;  %v1341_v56 = vor.u32 %v1569_v48, %v1340_v47  ;;  %v1567_v61 = vld [vmem:[#allocation8 + $0x164] sm:$0xf0]  ;;  %v1260_v63 = vld [vmem:[#allocation8 + $0xd0] sm:$0xf] }
  0x2d   :  { %246 = vmatpush.bf16.msra.mxu3 %v1089_v36  ;;  %v1133_v57 = vor.u32 %v1515_v42, %v1130_v50  ;;  %v1114_v62 = vld [vmem:[#allocation5 + $0x38] sm:$0xf0]  ;;  %697 = vmatpush.bf16.msra.mxu0 %v1213_v53  ;;  %v1196_v2 = vld [vmem:[#allocation8 + $0x50] sm:$0xf]  ;;  %v1507_v4 = vld [vmem:[#allocation5 + $0xc] sm:$0xf]  ;;  %v1333_v5 = vor.u32 %v1567_v61, %v1332_v60 }
  0x2e   :  { %260 = vmatpush.bf16.msra.mxu1 %v1093_v40  ;;  %v1549_v0 = vld [vmem:[#allocation8 + $0xd4] sm:$0xf0]  ;;  %v1117_v6 = vor.u32 %v1511_v58, %v1114_v62  ;;  %v1324_v9 = vld [vmem:[#allocation8 + $0x150] sm:$0xf]  ;;  %v1252_v11 = vld [vmem:[#allocation8 + $0xc0] sm:$0xf] }
  0x2f   :  { %274 = vmatpush.bf16.msra.mxu2 %v1097_v41  ;;  %v1533_v3 = vld [vmem:[#allocation8 + $0x54] sm:$0xf0]  ;;  %v1261_v8 = vor.u32 %v1549_v0, %v1260_v63  ;;  %v1547_v12 = vld [vmem:[#allocation8 + $0xc4] sm:$0xf0]  ;;  %v1188_v14 = vld [vmem:[#allocation8 + $0x40] sm:$0xf] }
  0x30   :  { %1150 = vmatmul.msk.bf16.vlgmr.msra.gmra.mxu3 %vm235_vm0, %v1895_v49  ;;  %v1098_v7 = vld [vmem:[#allocation5 + $0x18] sm:$0xf0]  ;;  %v1197_v13 = vor.u32 %v1533_v3, %v1196_v2  ;;  %v1531_v15 = vld [vmem:[#allocation8 + $0x44] sm:$0xf0]  ;;  %v1404_v16 = vld [vmem:[#allocation8 + $0x1f0] sm:$0xf]  ;;  %v1253_v20 = vor.u32 %v1547_v12, %v1252_v11 }
  0x31   :  { %285 = vmatpush.bf16.msrb.mxu3 %v1149_v44  ;;  %1151 = vmatmul.msk.bf16.vlgmr.msra.gmra.mxu1 %vm235_vm0, %v1895_v49  ;;  %v1565_v10 = vld [vmem:[#allocation8 + $0x154] sm:$0xf0]  ;;  %v1101_v19 = vor.u32 %v1507_v4, %v1098_v7  ;;  %v1244_v21 = vld [vmem:[#allocation8 + $0xb0] sm:$0xf]  ;;  %v1316_v22 = vld [vmem:[#allocation8 + $0x140] sm:$0xf]  ;;  %v1189_v25 = vor.u32 %v1531_v15, %v1188_v14 }
  0x32   :  { %711 = vmatpush.bf16.msrb.mxu1 %v1277_v45  ;;  %1152 = vmatmul.msk.bf16.vlgmr.msra.gmra.mxu2 %vm235_vm0, %v1895_v49  ;;  %v1585_v17 = vld [vmem:[#allocation8 + $0x1f4] sm:$0xf0]  ;;  %v1325_v18 = vor.u32 %v1565_v10, %v1324_v9  ;;  %v1563_v23 = vld [vmem:[#allocation8 + $0x144] sm:$0xf0]  ;;  %v1180_v27 = vld [vmem:[#allocation8 + $0x30] sm:$0xf] }
  0x33   :  { %725 = vmatpush.bf16.msrb.mxu2 %v1341_v56  ;;  %698 = vmatpush.bf16.msra.mxu0 %v1205_v1  ;;  %v1545_v24 = vld [vmem:[#allocation8 + $0xb4] sm:$0xf0]  ;;  %v1405_v26 = vor.u32 %v1585_v17, %v1404_v16  ;;  %v1317_v29 = vor.u32 %v1563_v23, %v1316_v22  ;;  %v1396_v30 = vld [vmem:[#allocation8 + $0x1e0] sm:$0xf]  ;;  %v1583_v31 = vld [vmem:[#allocation8 + $0x1e4] sm:$0xf0] }
  0x34   :  { %v1529_v28 = vld [vmem:[#allocation8 + $0x34] sm:$0xf0]  ;;  %v1245_v32 = vor.u32 %v1545_v24, %v1244_v21  ;;  %v1308_v33 = vld [vmem:[#allocation8 + $0x130] sm:$0xf]  ;;  %v1236_v35 = vld [vmem:[#allocation8 + $0xa0] sm:$0xf]  ;;  %v1397_v40 = vor.u32 %v1583_v31, %v1396_v30 }
  0x35   :  { %286 = vmatpush.bf16.msrb.mxu3 %v1133_v57  ;;  %v1561_v34 = vld [vmem:[#allocation8 + $0x134] sm:$0xf0]  ;;  %v1543_v36 = vld [vmem:[#allocation8 + $0xa4] sm:$0xf0]  ;;  %v1181_v37 = vor.u32 %v1529_v28, %v1180_v27  ;;  %v1172_v38 = vld [vmem:[#allocation8 + $0x20] sm:$0xf] }
  0x36   :  { %712 = vmatpush.bf16.msrb.mxu1 %v1269_v59  ;;  %v1527_v39 = vld [vmem:[#allocation8 + $0x24] sm:$0xf0]  ;;  %v1309_v41 = vor.u32 %v1561_v34, %v1308_v33  ;;  %v1237_v42 = vor.u32 %v1543_v36, %v1236_v35  ;;  %v1300_v43 = vld [vmem:[#allocation8 + $0x120] sm:$0xf]  ;;  %v1228_v45 = vld [vmem:[#allocation8 + $0x90] sm:$0xf] }
  0x37   :  { %726 = vmatpush.bf16.msrb.mxu2 %v1333_v5  ;;  %699 = vmatpush.bf16.msra.mxu0 %v1197_v13  ;;  %v1559_v44 = vld [vmem:[#allocation8 + $0x124] sm:$0xf0]  ;;  %v1541_v46 = vld [vmem:[#allocation8 + $0x94] sm:$0xf0]  ;;  %v1173_v47 = vor.u32 %v1527_v39, %v1172_v38  ;;  %v1220_v51 = vld [vmem:[#allocation8 + $0x80] sm:$0xf] }
  0x38   :  { %v1301_v48 = vor.u32 %v1559_v44, %v1300_v43  ;;  %v1229_v50 = vor.u32 %v1541_v46, %v1228_v45  ;;  %v1539_v52 = vld [vmem:[#allocation8 + $0x84] sm:$0xf0]  ;;  %v1552_v54 = vld [vmem:[#allocation8 + $0xf4] sm:$0xf]  ;;  %v1278_v55 = vld [vmem:[#allocation8 + $0xf8] sm:$0xf0] }
  0x39   :  { %287 = vmatpush.bf16.msrb.mxu3 %v1117_v6  ;;  %v1221_v53 = vor.u32 %v1539_v52, %v1220_v51  ;;  %v1281_v56 = vor.u32 %v1552_v54, %v1278_v55  ;;  %v1525_v57 = vld [vmem:[#allocation8 + $0x14] sm:$0xf0]  ;;  %v1292_v58 = vld [vmem:[#allocation8 + $0x110] sm:$0xf]  ;;  %v1550_v1 = vld [vmem:[#allocation8 + $0xe4] sm:$0xf] }
  0x3a   :  { %713 = vmatpush.bf16.msrb.mxu1 %v1261_v8  ;;  %v1557_v60 = vld [vmem:[#allocation8 + $0x114] sm:$0xf0]  ;;  %v1388_v61 = vld [vmem:[#allocation8 + $0x1d0] sm:$0xf]  ;;  %v1270_v2 = vld [vmem:[#allocation8 + $0xe8] sm:$0xf0] }
  0x3b   :  { %727 = vmatpush.bf16.msrb.mxu2 %v1325_v18  ;;  %700 = vmatpush.bf16.msra.mxu0 %v1189_v25  ;;  %v1581_v62 = vld [vmem:[#allocation8 + $0x1d4] sm:$0xf0]  ;;  %v1293_v63 = vor.u32 %v1557_v60, %v1292_v58  ;;  %v1273_v3 = vor.u32 %v1550_v1, %v1270_v2  ;;  %v1156_v4 = vld [vmem:[#allocation8] sm:$0xf]  ;;  %v1523_v5 = vld [vmem:[#allocation8 + $0x4] sm:$0xf0] }
  0x3c   :  { %v1389_v0 = vor.u32 %v1581_v62, %v1388_v61  ;;  %v1284_v6 = vld [vmem:[#allocation8 + $0x100] sm:$0xf]  ;;  %v1157_v7 = vor.u32 %v1523_v5, %v1156_v4  ;;  %v1555_v8 = vld [vmem:[#allocation8 + $0x104] sm:$0xf0]  ;;  %v1536_v13 = vld [vmem:[#allocation8 + $0x74] sm:$0xf] }
  0x3d   :  { %288 = vmatpush.bf16.msrb.mxu3 %v1101_v19  ;;  %v1380_v9 = vld [vmem:[#allocation8 + $0x1c0] sm:$0xf]  ;;  %v1579_v10 = vld [vmem:[#allocation8 + $0x1c4] sm:$0xf0]  ;;  %v1285_v11 = vor.u32 %v1555_v8, %v1284_v6  ;;  %v1214_v14 = vld [vmem:[#allocation8 + $0x78] sm:$0xf0] }
  0x3e   :  { %714 = vmatpush.bf16.msrb.mxu1 %v1253_v20  ;;  %v1381_v12 = vor.u32 %v1579_v10, %v1380_v9  ;;  %v1217_v15 = vor.u32 %v1536_v13, %v1214_v14  ;;  %v1568_v16 = vld [vmem:[#allocation8 + $0x174] sm:$0xf]  ;;  %v1342_v17 = vld [vmem:[#allocation8 + $0x178] sm:$0xf0]  ;;  %v1372_v21 = vld [vmem:[#allocation8 + $0x1b0] sm:$0xf] }
  0x3f   :  { %728 = vmatpush.bf16.msrb.mxu2 %v1317_v29  ;;  %701 = vmatpush.bf16.msra.mxu0 %v1181_v37  ;;  %v1548_v18 = vld [vmem:[#allocation8 + $0xd4] sm:$0xf]  ;;  %v1345_v19 = vor.u32 %v1568_v16, %v1342_v17  ;;  %v1262_v20 = vld [vmem:[#allocation8 + $0xd8] sm:$0xf0]  ;;  %v1577_v22 = vld [vmem:[#allocation8 + $0x1b4] sm:$0xf0] }
  0x40   :  { %1153 = vmatmul.msk.bf16.vlgmr.msrb.gmra.mxu3 %vm235_vm0, %v1895_v49  ;;  %v1164_v49 = vld [vmem:[#allocation8 + $0x10] sm:$0xf]  ;;  %v1265_v23 = vor.u32 %v1548_v18, %v1262_v20  ;;  %v1373_v24 = vor.u32 %v1577_v22, %v1372_v21  ;;  %v1534_v25 = vld [vmem:[#allocation8 + $0x64] sm:$0xf]  ;;  %v1334_v29 = vld [vmem:[#allocation8 + $0x168] sm:$0xf0] }
  0x41   :  { %739 = vmatpush.bf16.msra.mxu3 %v1405_v26  ;;  %v1165_v59 = vor.u32 %v1525_v57, %v1164_v49  ;;  %v1206_v26 = vld [vmem:[#allocation8 + $0x68] sm:$0xf0]  ;;  %v1566_v27 = vld [vmem:[#allocation8 + $0x164] sm:$0xf]  ;;  %v1364_v34 = vld [vmem:[#allocation8 + $0x1a0] sm:$0xf] }
  0x42   :  { %715 = vmatpush.bf16.msrb.mxu1 %v1245_v32  ;;  %v1209_v28 = vor.u32 %v1534_v25, %v1206_v26  ;;  %v1337_v30 = vor.u32 %v1566_v27, %v1334_v29  ;;  %v1546_v31 = vld [vmem:[#allocation8 + $0xc4] sm:$0xf]  ;;  %v1254_v32 = vld [vmem:[#allocation8 + $0xc8] sm:$0xf0]  ;;  %v1575_v35 = vld [vmem:[#allocation8 + $0x1a4] sm:$0xf0] }
  0x43   :  { %729 = vmatpush.bf16.msrb.mxu2 %v1309_v41  ;;  %702 = vmatpush.bf16.msra.mxu0 %v1173_v47  ;;  %v1257_v33 = vor.u32 %v1546_v31, %v1254_v32  ;;  %v1365_v36 = vor.u32 %v1575_v35, %v1364_v34  ;;  %v1532_v37 = vld [vmem:[#allocation8 + $0x54] sm:$0xf]  ;;  %v1198_v38 = vld [vmem:[#allocation8 + $0x58] sm:$0xf0]  ;;  %v1356_v46 = vld [vmem:[#allocation8 + $0x190] sm:$0xf] }
  0x44   :  { %v1564_v39 = vld [vmem:[#allocation8 + $0x154] sm:$0xf]  ;;  %v1326_v41 = vld [vmem:[#allocation8 + $0x158] sm:$0xf0]  ;;  %v1573_v47 = vld [vmem:[#allocation8 + $0x194] sm:$0xf0] }
  0x45   :  { %740 = vmatpush.bf16.msra.mxu3 %v1397_v40  ;;  %v1201_v40 = vor.u32 %v1532_v37, %v1198_v38  ;;  %v1544_v43 = vld [vmem:[#allocation8 + $0xb4] sm:$0xf]  ;;  %v1246_v44 = vld [vmem:[#allocation8 + $0xb8] sm:$0xf0]  ;;  %v1190_v51 = vld [vmem:[#allocation8 + $0x48] sm:$0xf0] }
  0x46   :  { %716 = vmatpush.bf16.msrb.mxu1 %v1237_v42  ;;  %v1329_v42 = vor.u32 %v1564_v39, %v1326_v41  ;;  %v1249_v45 = vor.u32 %v1544_v43, %v1246_v44  ;;  %v1562_v52 = vld [vmem:[#allocation8 + $0x144] sm:$0xf]  ;;  %v1318_v54 = vld [vmem:[#allocation8 + $0x148] sm:$0xf0]  ;;  %v1348_v58 = vld [vmem:[#allocation8 + $0x180] sm:$0xf] }
  0x47   :  { %730 = vmatpush.bf16.msrb.mxu2 %v1301_v48  ;;  %703 = vmatpush.bf16.msra.mxu0 %v1165_v59  ;;  %v1357_v48 = vor.u32 %v1573_v47, %v1356_v46  ;;  %v1321_v55 = vor.u32 %v1562_v52, %v1318_v54  ;;  %v1238_v49 = vld [vmem:[#allocation8 + $0xa8] sm:$0xf0]  ;;  %v1571_v59 = vld [vmem:[#allocation8 + $0x184] sm:$0xf0]  ;;  %v1528_v61 = vld [vmem:[#allocation8 + $0x34] sm:$0xf] }
  0x48   :  { %v1349_v60 = vor.u32 %v1571_v59, %v1348_v58  ;;  %v1182_v62 = vld [vmem:[#allocation8 + $0x38] sm:$0xf0]  ;;  %v1584_v2 = vld [vmem:[#allocation8 + $0x1f4] sm:$0xf]  ;;  %v1526_v9 = vld [vmem:[#allocation8 + $0x24] sm:$0xf] }
  0x49   :  { %741 = vmatpush.bf16.msra.mxu3 %v1389_v0  ;;  %v1185_v0 = vor.u32 %v1528_v61, %v1182_v62  ;;  %v1310_v1 = vld [vmem:[#allocation8 + $0x138] sm:$0xf0]  ;;  %v1540_v6 = vld [vmem:[#allocation8 + $0x94] sm:$0xf]  ;;  %v1174_v10 = vld [vmem:[#allocation8 + $0x28] sm:$0xf0] }
  0x4a   :  { %717 = vmatpush.bf16.msrb.mxu1 %v1229_v50  ;;  %v1530_v50 = vld [vmem:[#allocation8 + $0x44] sm:$0xf]  ;;  %v1302_v13 = vld [vmem:[#allocation8 + $0x128] sm:$0xf0]  ;;  %v1524_v21 = vld [vmem:[#allocation8 + $0x14] sm:$0xf] }
  0x4b   :  { %731 = vmatpush.bf16.msrb.mxu2 %v1293_v63  ;;  %704 = vmatpush.bf16.msra.mxu0 %v1157_v7  ;;  %v1560_v63 = vld [vmem:[#allocation8 + $0x134] sm:$0xf]  ;;  %v1230_v7 = vld [vmem:[#allocation8 + $0x98] sm:$0xf0]  ;;  %v1582_v14 = vld [vmem:[#allocation8 + $0x1e4] sm:$0xf] }
  0x4c   :  { %v1313_v4 = vor.u32 %v1560_v63, %v1310_v1  ;;  %v1233_v8 = vor.u32 %v1540_v6, %v1230_v7  ;;  %v1538_v18 = vld [vmem:[#allocation8 + $0x84] sm:$0xf]  ;;  %v1166_v22 = vld [vmem:[#allocation8 + $0x18] sm:$0xf0]  ;;  %v1580_v26 = vld [vmem:[#allocation8 + $0x1d4] sm:$0xf] }
  0x4d   :  { %742 = vmatpush.bf16.msra.mxu3 %v1381_v12  ;;  %v1177_v12 = vor.u32 %v1526_v9, %v1174_v10  ;;  %v1294_v25 = vld [vmem:[#allocation8 + $0x118] sm:$0xf0]  ;;  %v1522_v31 = vld [vmem:[#allocation8 + $0x4] sm:$0xf]  ;;  %v1158_v32 = vld [vmem:[#allocation8 + $0x8] sm:$0xf0] }
  0x4e   :  { %718 = vmatpush.bf16.msrb.mxu1 %v1221_v53  ;;  %v1193_v53 = vor.u32 %v1530_v50, %v1190_v51  ;;  %v1390_v27 = vld [vmem:[#allocation8 + $0x1d8] sm:$0xf0]  ;;  %v1161_v35 = vor.u32 %v1522_v31, %v1158_v32  ;;  %v1578_v37 = vld [vmem:[#allocation8 + $0x1c4] sm:$0xf]  ;;  %v1382_v38 = vld [vmem:[#allocation8 + $0x1c8] sm:$0xf0] }
  0x4f   :  { %732 = vmatpush.bf16.msrb.mxu2 %v1285_v11  ;;  %753 = vmatpush.bf16.msrb.mxu0 %v1217_v15  ;;  %v1558_v11 = vld [vmem:[#allocation8 + $0x124] sm:$0xf]  ;;  %v1398_v15 = vld [vmem:[#allocation8 + $0x1e8] sm:$0xf0]  ;;  %v1393_v29 = vor.u32 %v1580_v26, %v1390_v27  ;;  %v1385_v41 = vor.u32 %v1578_v37, %v1382_v38  ;;  %v1374_v43 = vld [vmem:[#allocation8 + $0x1b8] sm:$0xf0] }
  0x50   :  { %v1305_v16 = vor.u32 %v1558_v11, %v1302_v13  ;;  %v1401_v17 = vor.u32 %v1582_v14, %v1398_v15  ;;  %v1574_v47 = vld [vmem:[#allocation8 + $0x1a4] sm:$0xf]  ;;  %v1350_v63 = vld [vmem:[#allocation8 + $0x188] sm:$0xf0]  ;;  %v1588_v26 = vld [vmem:[#allocation10 + $0x10] sm:$0xff] }
  0x51   :  { %743 = vmatpush.bf16.msra.mxu3 %v1373_v24  ;;  %v1169_v24 = vor.u32 %v1524_v21, %v1166_v22  ;;  %v1570_v62 = vld [vmem:[#allocation8 + $0x184] sm:$0xf]  ;;  %v1592_v21 = vld [vmem:[#allocation10 + $0x30] sm:$0xff]  ;;  %v1591_v22 = vld [vmem:[#allocation10 + $0x28] sm:$0xff] }
  0x52   :  { %767 = vmatpush.bf16.msra.mxu1 %v1281_v56  ;;  %v1542_v56 = vld [vmem:[#allocation8 + $0xa4] sm:$0xf]  ;;  %v1353_v6 = vor.u32 %v1570_v62, %v1350_v63  ;;  %v1600_v27 = vld [vmem:[#allocation10 + $0x70] sm:$0xff]  ;;  %v1597_v32 = vld [vmem:[#allocation10 + $0x58] sm:$0xff] }
  0x53   :  { %781 = vmatpush.bf16.msra.mxu2 %v1345_v19  ;;  %754 = vmatpush.bf16.msrb.mxu0 %v1209_v28  ;;  %v1241_v57 = vor.u32 %v1542_v56, %v1238_v49  ;;  %v1222_v19 = vld [vmem:[#allocation8 + $0x88] sm:$0xf0]  ;;  %v1358_v56 = vld [vmem:[#allocation8 + $0x198] sm:$0xf0]  ;;  %v1598_v31 = vld [vmem:[#allocation10 + $0x60] sm:$0xff] }
  0x54   :  { %v1225_v20 = vor.u32 %v1538_v18, %v1222_v19  ;;  %v1595_v37 = vld [vmem:[#allocation10 + $0x48] sm:$0xff] }
  0x55   :  { %744 = vmatpush.bf16.msra.mxu3 %v1365_v36  ;;  %v1286_v36 = vld [vmem:[#allocation8 + $0x108] sm:$0xf0] }
  0x56   :  { %768 = vmatpush.bf16.msra.mxu1 %v1273_v3  ;;  %v1406_v3 = vld [vmem:[#allocation8 + $0x1f8] sm:$0xf0]  ;;  %v371_v38 = vld [vmem:[%s1930_s4] sm:$0x3] }
  0x57   :  { %782 = vmatpush.bf16.msra.mxu2 %v1337_v30  ;;  %755 = vmatpush.bf16.msrb.mxu0 %v1201_v40  ;;  %v1409_v5 = vor.u32 %v1584_v2, %v1406_v3  ;;  %v1905_v30 = vld [vmem:[#allocation7] sm:$0xf] }
  0x58   :  { %v148_v39 = vperm.slane %v1905_v30, 1  ;;  %v149_v51 = vperm.slane %v1905_v30, 2  ;;  %v150_v13 = vperm.slane %v1905_v30, 3 }
  0x59   :  { %745 = vmatpush.bf16.msra.mxu3 %v1357_v48  ;;  %v1366_v48 = vld [vmem:[#allocation8 + $0x1a8] sm:$0xf0] }
  0x5a   :  { %769 = vmatpush.bf16.msra.mxu1 %v1265_v23  ;;  %v1556_v23 = vld [vmem:[#allocation8 + $0x114] sm:$0xf]  ;;  %v1369_v52 = vor.u32 %v1574_v47, %v1366_v48 }
  0x5b   :  { %783 = vmatpush.bf16.msra.mxu2 %v1329_v42  ;;  %756 = vmatpush.bf16.msrb.mxu0 %v1193_v53  ;;  %v1297_v28 = vor.u32 %v1556_v23, %v1294_v25  ;;  %v1576_v42 = vld [vmem:[#allocation8 + $0x1b4] sm:$0xf]  ;;  %v147_v53 = vperm.slane %v1905_v30, 0  ;;  %v1590_v23 = vld [vmem:[#allocation10 + $0x20] sm:$0xff]  ;;  %v1601_v25 = vld [vmem:[#allocation10 + $0x78] sm:$0xff] }
  0x5c   :  { %v1377_v44 = vor.u32 %v1576_v42, %v1374_v43  ;;  %v1586_v30 = vld [vmem:[#allocation10] sm:$0xff] }
  0x5d   :  { %746 = vmatpush.bf16.msra.mxu3 %v1349_v60 }
  0x5e   :  { %770 = vmatpush.bf16.msra.mxu1 %v1257_v33  ;;  %v1554_v33 = vld [vmem:[#allocation8 + $0x104] sm:$0xf] }
  0x5f   :  { %784 = vmatpush.bf16.msra.mxu2 %v1321_v55  ;;  %757 = vmatpush.bf16.msrb.mxu0 %v1185_v0  ;;  %v1289_v40 = vor.u32 %v1554_v33, %v1286_v36  ;;  %v1572_v55 = vld [vmem:[#allocation8 + $0x194] sm:$0xf] }
  0x60   :  { %v1361_v60 = vor.u32 %v1572_v55, %v1358_v56 }
  0x61   :  { %795 = vmatpush.bf16.msrb.mxu3 %v1409_v5 }
  0x62   :  { %771 = vmatpush.bf16.msra.mxu1 %v1249_v45 }
  0x63   :  { %785 = vmatpush.bf16.msra.mxu2 %v1313_v4  ;;  %758 = vmatpush.bf16.msrb.mxu0 %v1177_v12 }
  0x65   :  { %796 = vmatpush.bf16.msrb.mxu3 %v1401_v17 }
  0x66   :  { %772 = vmatpush.bf16.msra.mxu1 %v1241_v57 }
  0x67   :  { %786 = vmatpush.bf16.msra.mxu2 %v1305_v16  ;;  %759 = vmatpush.bf16.msrb.mxu0 %v1169_v24  ;;  %v1589_v24 = vld [vmem:[#allocation10 + $0x18] sm:$0xff] }
  0x69   :  { %797 = vmatpush.bf16.msrb.mxu3 %v1393_v29  ;;  %v1599_v29 = vld [vmem:[#allocation10 + $0x68] sm:$0xff] }
  0x6a   :  { %773 = vmatpush.bf16.msra.mxu1 %v1233_v8 }
  0x6b   :  { %787 = vmatpush.bf16.msra.mxu2 %v1297_v28  ;;  %760 = vmatpush.bf16.msrb.mxu0 %v1161_v35  ;;  %v1587_v28 = vld [vmem:[#allocation10 + $0x8] sm:$0xff] }
  0x6d   :  { %798 = vmatpush.bf16.msrb.mxu3 %v1385_v41  ;;  %v1594_v41 = vld [vmem:[#allocation10 + $0x40] sm:$0xff] }
  0x6e   :  { %774 = vmatpush.bf16.msra.mxu1 %v1225_v20  ;;  %v1593_v20 = vld [vmem:[#allocation10 + $0x38] sm:$0xff] }
  0x6f   :  { %788 = vmatpush.bf16.msra.mxu2 %v1289_v40  ;;  %v373_v40 = vperm.slane %v371_v38, 0 }
  0x71   :  { %799 = vmatpush.bf16.msrb.mxu3 %v1377_v44 }
  0x75   :  { %800 = vmatpush.bf16.msrb.mxu3 %v1369_v52 }
  0x79   :  { %801 = vmatpush.bf16.msrb.mxu3 %v1361_v60 }
  0x7d   :  { %802 = vmatpush.bf16.msrb.mxu3 %v1353_v6 }
  0xae   :  { %v262_v34 = vpop.f32.mrf.mxu1 }
  0xaf   :  { %v263_v45 = vadd.f32 %v262_v34, %v148_v39  ;;  %v1596_v34 = vld [vmem:[#allocation10 + $0x50] sm:$0xff] }
  0xb1   :  { %v296_v49 = vmax.f32 %v263_v45, 0.0 }
  0xb3   :  { %v248_v46 = vpop.f32.mrf.mxu3 }
  0xb4   :  { %v249_v61 = vadd.f32 %v248_v46, %v147_v53 }
  0xb5   :  { %v276_v50 = vpop.f32.mrf.mxu2 }
  0xb6   :  { %v264_v54 = vpop.f32.mrf.mxu1  ;;  %v277_v58 = vadd.f32 %v276_v50, %v149_v51  ;;  %v295_v7 = vmax.f32 %v249_v61, 0.0 }
  0xb7   :  { %v265_v57 = vadd.f32 %v264_v54, %v148_v39 }
  0xb8   :  { %v297_v4 = vmax.f32 %v277_v58, 0.0 }
  0xb9   :  { %v300_v59 = vmax.f32 %v265_v57, 0.0  ;;  %v374_v57 = vperm.slane %v371_v38, 1 }
  0xbb   :  { %v304_v0 = vpack.c.bf16 %v300_v59, %v296_v49  ;;  %v250_v1 = vpop.f32.mrf.mxu3 }
  0xbc   :  { %v251_v2 = vadd.f32 %v250_v1, %v147_v53 }
  0xbd   :  { %v278_v3 = vpop.f32.mrf.mxu2  ;;  %719 = vmatmul.bf16.vlgmr.msrb.gmra.mxu1 %v304_v0 }
  0xbe   :  { %v279_v5 = vadd.f32 %v278_v3, %v149_v51  ;;  %v299_v8 = vmax.f32 %v251_v2, 0.0  ;;  %961 = vmatpush.bf16.msrb.mxu1 %v1601_v25 }
  0xc0   :  { %v301_v9 = vmax.f32 %v279_v5, 0.0  ;;  %v303_v10 = vpack.c.bf16 %v299_v8, %v295_v7 }
  0xc2   :  { %v305_v11 = vpack.c.bf16 %v301_v9, %v297_v4  ;;  %705 = vmatmul.bf16.vlgmr.msra.gmra.mxu0 %v303_v10  ;;  %962 = vmatpush.bf16.msrb.mxu1 %v1600_v27 }
  0xc3   :  { %v290_v12 = vpop.f32.mrf.mxu3  ;;  %947 = vmatpush.bf16.msra.mxu0 %v1593_v20  ;;  %v1602_v20 = vld [vmem:[#allocation11] sm:$0xff] }
  0xc4   :  { %733 = vmatmul.bf16.vlgmr.msrb.gmra.mxu2 %v305_v11  ;;  %v291_v14 = vadd.f32 %v290_v12, %v150_v13 }
  0xc6   :  { %v298_v17 = vmax.f32 %v291_v14, 0.0  ;;  %963 = vmatpush.bf16.msrb.mxu1 %v1599_v29  ;;  %v1608_v14 = vld [vmem:[#allocation11 + $0x30] sm:$0xff] }
  0xc7   :  { %948 = vmatpush.bf16.msra.mxu0 %v1592_v21 }
  0xca   :  { %964 = vmatpush.bf16.msrb.mxu1 %v1598_v31 }
  0xcb   :  { %v292_v15 = vpop.f32.mrf.mxu3  ;;  %949 = vmatpush.bf16.msra.mxu0 %v1591_v22 }
  0xcc   :  { %v293_v16 = vadd.f32 %v292_v15, %v150_v13  ;;  %v1609_v13 = vld [vmem:[#allocation11 + $0x38] sm:$0xff]  ;;  %v1607_v15 = vld [vmem:[#allocation11 + $0x28] sm:$0xff] }
  0xcd   :  { %775 = vmatmul.bf16.vlgmr.msra.gmra.mxu1 %v304_v0  ;;  %1046 = vmatpush.bf16.msrb.mxu2 %v1609_v13 }
  0xce   :  { %v302_v18 = vmax.f32 %v293_v16, 0.0  ;;  %965 = vmatpush.bf16.msrb.mxu1 %v1597_v32  ;;  %v1606_v16 = vld [vmem:[#allocation11 + $0x20] sm:$0xff] }
  0xcf   :  { %950 = vmatpush.bf16.msra.mxu0 %v1590_v23  ;;  %v1628_v23 = vld [vmem:[%s1932_s6] ss:$0 sm:$0xff] }
  0xd0   :  { %v306_v19 = vpack.c.bf16 %v302_v18, %v298_v17  ;;  %v1605_v17 = vld [vmem:[#allocation11 + $0x18] sm:$0xff]  ;;  %v1604_v18 = vld [vmem:[#allocation11 + $0x10] sm:$0xff] }
  0xd1   :  { %1047 = vmatpush.bf16.msrb.mxu2 %v1608_v14 }
  0xd2   :  { %747 = vmatmul.bf16.vlgmr.msra.gmra.mxu3 %v306_v19  ;;  %761 = vmatmul.bf16.vlgmr.msrb.gmra.mxu0 %v303_v10 }
  0xd3   :  { %951 = vmatpush.bf16.msra.mxu0 %v1589_v24  ;;  %966 = vmatpush.bf16.msrb.mxu1 %v1596_v34  ;;  %v1629_v34 = vld [vmem:[%s1934_s8] ss:$0 sm:$0xff] }
  0xd4   :  { %789 = vmatmul.bf16.vlgmr.msra.gmra.mxu2 %v305_v11 }
  0xd5   :  { %1048 = vmatpush.bf16.msrb.mxu2 %v1607_v15 }
  0xd7   :  { %952 = vmatpush.bf16.msra.mxu0 %v1588_v26  ;;  %967 = vmatpush.bf16.msrb.mxu1 %v1595_v37 }
  0xd9   :  { %1049 = vmatpush.bf16.msrb.mxu2 %v1606_v16 }
  0xdb   :  { %953 = vmatpush.bf16.msra.mxu0 %v1587_v28  ;;  %968 = vmatpush.bf16.msrb.mxu1 %v1594_v41 }
  0xdd   :  { %1050 = vmatpush.bf16.msrb.mxu2 %v1605_v17 }
  0xdf   :  { %954 = vmatpush.bf16.msra.mxu0 %v1586_v30 }
  0xe1   :  { %1051 = vmatpush.bf16.msrb.mxu2 %v1604_v18 }
  0xe2   :  { %803 = vmatmul.bf16.vlgmr.msrb.gmra.mxu3 %v306_v19  ;;  %v1603_v19 = vld [vmem:[#allocation11 + $0x8] sm:$0xff] }
  0xe5   :  { %1052 = vmatpush.bf16.msrb.mxu2 %v1603_v19 }
  0xe9   :  { %1053 = vmatpush.bf16.msrb.mxu2 %v1602_v20 }
 0x13a   :  { %v720_v35 = vpop.f32.mrf.mxu1 }
 0x13f   :  { %v706_v33 = vpop.f32.mrf.mxu0 }
 0x140   :  { %v707_v42 = vadd.f32 %v706_v33, %v373_v40 }
 0x142   :  { %v722_v43 = vpop.f32.mrf.mxu1  ;;  %v721_v47 = vadd.f32 %v720_v35, %v707_v42 }
 0x147   :  { %v734_v36 = vpop.f32.mrf.mxu2  ;;  %v708_v39 = vpop.f32.mrf.mxu0 }
 0x148   :  { %v709_v46 = vadd.f32 %v708_v39, %v373_v40  ;;  %v735_v50 = vadd.f32 %v734_v36, %v721_v47 }
 0x14a   :  { %v723_v51 = vadd.f32 %v722_v43, %v709_v46  ;;  %v776_v56 = vpop.f32.mrf.mxu1 }
 0x14f   :  { %v736_v44 = vpop.f32.mrf.mxu2  ;;  %v762_v48 = vpop.f32.mrf.mxu0 }
 0x150   :  { %v737_v52 = vadd.f32 %v736_v44, %v723_v51  ;;  %v763_v62 = vadd.f32 %v762_v48, %v374_v57 }
 0x152   :  { %v777_v1 = vadd.f32 %v776_v56, %v763_v62  ;;  %v778_v2 = vpop.f32.mrf.mxu1 }
 0x155   :  { %v748_v45 = vpop.f32.mrf.mxu3 }
 0x156   :  { %v749_v53 = vadd.f32 %v748_v45, %v735_v50 }
 0x157   :  { %v790_v49 = vpop.f32.mrf.mxu2  ;;  %v764_v61 = vpop.f32.mrf.mxu0 }
 0x158   :  { %v809_v58 = vmax.f32 %v749_v53, 0.0  ;;  %v765_v0 = vadd.f32 %v764_v61, %v374_v57  ;;  %v791_v4 = vadd.f32 %v790_v49, %v777_v1 }
 0x15a   :  { %v779_v5 = vadd.f32 %v778_v2, %v765_v0 }
 0x15d   :  { %v750_v54 = vpop.f32.mrf.mxu3 }
 0x15e   :  { %v751_v55 = vadd.f32 %v750_v54, %v737_v52 }
 0x15f   :  { %v792_v3 = vpop.f32.mrf.mxu2 }
 0x160   :  { %v811_v59 = vmax.f32 %v751_v55, 0.0  ;;  %v793_v6 = vadd.f32 %v792_v3, %v779_v5 }
 0x162   :  { %v813_v60 = vpack.c.bf16 %v811_v59, %v809_v58 }
 0x164   :  { %955 = vmatmul.bf16.vlgmr.msra.gmra.mxu0 %v813_v60 }
 0x165   :  { %v804_v63 = vpop.f32.mrf.mxu3 }
 0x166   :  { %v805_v7 = vadd.f32 %v804_v63, %v791_v4 }
 0x168   :  { %v810_v10 = vmax.f32 %v805_v7, 0.0 }
 0x16d   :  { %v806_v8 = vpop.f32.mrf.mxu3 }
 0x16e   :  { %v807_v9 = vadd.f32 %v806_v8, %v793_v6 }
 0x170   :  { %v812_v11 = vmax.f32 %v807_v9, 0.0 }
 0x172   :  { %v814_v12 = vpack.c.bf16 %v812_v11, %v810_v10 }
 0x174   :  { %969 = vmatmul.bf16.vlgmr.msrb.gmra.mxu1 %v814_v12 }
 0x1e1   :  { %v956_v21 = vpop.f32.mrf.mxu0 }
 0x1e2   :  { %v957_v25 = vadd.f32 %v1628_v23, %v956_v21 }
 0x1e9   :  { %v958_v24 = vpop.f32.mrf.mxu0 }
 0x1ea   :  { %v959_v26 = vadd.f32 %v1628_v23, %v958_v24 }
 0x1f1   :  { %v970_v22 = vpop.f32.mrf.mxu1 }
 0x1f2   :  { %v971_v27 = vadd.f32 %v970_v22, %v957_v25 }
 0x1f4   :  { %v975_v30 = vmax.f32 %v971_v27, 0.0 }
 0x1f9   :  { %v972_v28 = vpop.f32.mrf.mxu1 }
 0x1fa   :  { %v973_v29 = vadd.f32 %v972_v28, %v959_v26 }
 0x1fc   :  { %v976_v31 = vmax.f32 %v973_v29, 0.0 }
 0x1fe   :  { %v977_v32 = vpack.c.bf16 %v976_v31, %v975_v30 }
 0x200   :  { %1054 = vmatmul.bf16.vlgmr.msrb.gmra.mxu2 %v977_v32 }
 0x283   :  { %v1055_v33 = vpop.f32.mrf.mxu2 }
 0x284   :  { %v1056_v36 = vadd.f32 %v1629_v34, %v1055_v33 }
 0x28b   :  { %v1057_v35 = vpop.f32.mrf.mxu2 }
 0x28c   :  { %v1058_v37 = vadd.f32 %v1629_v34, %v1057_v35 }
 0x28e   :  { %v1613_v38 = vpack.c.bf16 %v1058_v37, %v1056_v36 }
 0x290   :  { %1614 = vst [vmem:[#allocation13] sm:$0xff] %v1613_v38  }
 0x291   :  { %1067 = vsyncadd [#allocation4], 64  ;;  %s1070_s1 = sshll.u32 %s1935_s9, 4  ;;  %s1820_s24 = smov [#allocation13]   ;;  %s1071_s1 = int_to_ptr.hbm [resolvable:$true] %s1070_s1 }
 0x292   :  { %s1068_s25 = sshll.u32 %s1820_s24, 4  ;;  %s1069_s25 = int_to_ptr.vmem [resolvable:$true] %s1068_s25 }
 0x293   :  { %1076 = dma.vmem_to_hbm [thread:$0]  %s1069_s25, 64, %s1071_s1, [#allocation4], %s1817_s16, %s1817_s16, %s1818_s17  }
 0x294   :  { %1806 = dma.done.wait [#allocation4], 128  }
 0x295   :  { %1807 = vsyncadd [#allocation4], 4294967168 }
 0x296   :  { %1081 = vsyncpa [#allocation3], 1 }
 0x297   :  { %1082 = vsyncpa [#allocation6], 1 }
 0x298   :  { %1083 = vsyncpa [#allocation9], 1 }
 0x299   :  { %1084 = vsyncpa [#allocation12], 1 }
 0x29a   :  { %1085 = vsyncpa [#allocation4], 1 }

</bundles_post_ra>
